<compile_context>
chip_gen: v6e
topology: v6e:2x2x1
jax: 0.10.0
libtpu: 0.0.40
codegen_flags: <defaults>
</compile_context>

<pallas_src>
import functools

import jax
import jax.numpy as jnp
from jax.experimental import pallas as pl
from jax.experimental.pallas import tpu as pltpu


def _round_up(x, m):
    return ((x + m - 1) // m) * m


# ---------------------------------------------------------------------------
# Kernel
# ---------------------------------------------------------------------------
def _highway_kernel(x_ref, w_ref, b_ref, o_ref, *, n_layers, hp):
    """All highway layers on one [tm, Hp] tile of rows.

    x_ref : [tm, Hp]          activation tile
    w_ref : [L, Hp, 3*Hp]     fused weights [Wt | Wc | Wf] (bf16), VMEM-resident
    b_ref : [L, 1, 3*Hp]      fused biases  [bt | bc | bf] (f32)
    o_ref : [tm, Hp]          output tile
    """
    x = x_ref[...].astype(jnp.float32)

    def layer(l, x):
        w = w_ref[l]                                   # [Hp, 3*Hp], bf16
        lin = jnp.dot(x.astype(w.dtype), w,            # one fused MXU matmul, f32 acc
                      preferred_element_type=jnp.float32)
        lin = lin + b_ref[l].astype(jnp.float32)       # broadcast-add over [tm, 3Hp]
        t = jax.nn.sigmoid(lin[:, 0 * hp:1 * hp])      # transform gate  (EUP)
        c = jax.nn.sigmoid(lin[:, 1 * hp:2 * hp])      # carry gate      (EUP)
        f = lin[:, 2 * hp:3 * hp]                      # fc branch
        return jnp.maximum(t * f + c * x, 0.0)         # highway combine + ReLU (VALU)

    if n_layers <= 4:
        # Small static L: unroll for full scheduler visibility.
        for l in range(n_layers):
            x = layer(l, x)
    else:
        # Deep stacks: bound live ranges of the per-layer [tm, 3Hp] temps.
        x = jax.lax.fori_loop(0, n_layers, layer, x)

    o_ref[...] = x.astype(o_ref.dtype)


# ---------------------------------------------------------------------------
# Parameter construction / packing
# ---------------------------------------------------------------------------
def init_highway_params(key, input_size, n_layers, dtype=jnp.float32):
    """Deterministic synthetic parameters (PyTorch nn.Linear-style uniform init).

    Weights stored as [H_in, H_out] (transpose of torch layout): out = x @ W + b.
    """
    params = []
    bound = 1.0 / (input_size ** 0.5)
    for _ in range(n_layers):
        layer = {}
        for name in ("transform", "carry", "fc"):
            key, kw, kb = jax.random.split(key, 3)
            w = jax.random.uniform(kw, (input_size, input_size), dtype,
                                   minval=-bound, maxval=bound)
            b = jax.random.uniform(kb, (1, input_size), dtype,
                                   minval=-bound, maxval=bound)
            layer[name] = (w, b)
        params.append(layer)
    return params


def pack_highway_params(params, input_size, weight_dtype=jnp.bfloat16):
    """Fuse per-layer (transform, carry, fc) into [L, Hp, 3*Hp] / [L, 1, 3*Hp].

    Feature dim zero-padded to a multiple of 128 -> lane-dense loads/stores and
    lane-aligned t/c/f slices. Zero weight rows/cols + zero bias pad keep the padded
    activation lanes exactly 0 through every layer (f_pad=0, x_pad=0).
    """
    h = input_size
    hp = _round_up(h, 128)
    n_layers = len(params)

    w_stack = jnp.zeros((n_layers, hp, 3 * hp), jnp.float32)
    b_stack = jnp.zeros((n_layers, 1, 3 * hp), jnp.float32)
    for l, layer in enumerate(params):
        for k, name in enumerate(("transform", "carry", "fc")):
            w, b = layer[name]
            w_stack = w_stack.at[l, :h, k * hp:k * hp + h].set(w.astype(jnp.float32))
            b_stack = b_stack.at[l, :, k * hp:k * hp + h].set(b.astype(jnp.float32))

    return w_stack.astype(weight_dtype), b_stack


# ---------------------------------------------------------------------------
# Tiling / generation gating
# ---------------------------------------------------------------------------
def _tpu_defaults():
    """Gen-gated row-tile cap and scoped-VMEM budget (conservative when unknown)."""
    tm_max, vmem_limit = 256, 48 * 1024 * 1024          # safe on v7x (64 MiB physical)
    try:
        kind = jax.devices()[0].device_kind.lower()
        if any(g in kind for g in ("v4", "v5", "v6")):   # 128 MiB physical VMEM
            tm_max, vmem_limit = 512, 96 * 1024 * 1024
    except Exception:
        pass
    return {"tm_max": tm_max, "vmem_limit_bytes": vmem_limit, "min_grid_steps": 2}


def _pick_row_tile(n, tm_max, min_grid_steps):
    """Balanced row tile: >= min_grid_steps blocks, no nearly-empty trailing block."""
    n8 = _round_up(n, 8)
    blocks = max(pl.cdiv(n8, tm_max), min_grid_steps)
    blocks = min(blocks, pl.cdiv(n8, 8))                 # can't tile below 8 rows
    tm = _round_up(pl.cdiv(n8, blocks), 8)
    return min(tm, tm_max)


_HAS_BUFFERED = hasattr(pl, "Buffered")


def _resident_spec(block_shape, single_buffer):
    """Grid-invariant (constant index_map) block; single-buffered when supported."""
    index_map = lambda i: (0,) * len(block_shape)
    if single_buffer and _HAS_BUFFERED:
        try:
            return pl.BlockSpec(block_shape, index_map, pipeline_mode=pl.Buffered(1))
        except TypeError:          # jax without BlockSpec(pipeline_mode=...)
            pass
    return pl.BlockSpec(block_shape, index_map)


# ---------------------------------------------------------------------------
# Forward wrapper
# ---------------------------------------------------------------------------
@functools.partial(jax.jit,
                   static_argnames=("tm", "vmem_limit_bytes", "single_buffer_weights"))
def _highway_pallas(x2, w_stack, b_stack, *, tm, vmem_limit_bytes,
                    single_buffer_weights):
    n, hp = x2.shape
    n_layers, _, hp3 = w_stack.shape

    kernel = functools.partial(_highway_kernel, n_layers=n_layers, hp=hp)

    return pl.pallas_call(
        kernel,
        out_shape=jax.ShapeDtypeStruct((n, hp), x2.dtype),
        grid_spec=pltpu.PrefetchScalarGridSpec(
            num_scalar_prefetch=0,
            grid=(pl.cdiv(n, tm),),
            in_specs=[
                pl.BlockSpec((tm, hp), lambda i: (i, 0)),               # activation rows
                _resident_spec((n_layers, hp, hp3), single_buffer_weights),  # weights
                _resident_spec((n_layers, 1, hp3), single_buffer_weights),   # biases
            ],
            out_specs=pl.BlockSpec((tm, hp), lambda i: (i, 0)),
        ),
        compiler_params=pltpu.CompilerParams(
            dimension_semantics=("parallel",),
            vmem_limit_bytes=vmem_limit_bytes,
        ),
    )(x2, w_stack, b_stack)


def highway_v2_forward(x, w_stack, b_stack):
    """x: [..., H] -> [..., H]   (matches Highway_v2.forward semantics)."""
    orig_shape = x.shape
    h = orig_shape[-1]
    n_layers, hp, hp3 = w_stack.shape

    x2 = x.reshape(-1, h)
    if hp != h:
        x2 = jnp.pad(x2, ((0, 0), (0, hp - h)))          # lane-pad feature dim only if needed
    n = x2.shape[0]

    cfg = _tpu_defaults()
    tm = _pick_row_tile(n, cfg["tm_max"], cfg["min_grid_steps"])

    try:
        out = _highway_pallas(x2, w_stack, b_stack, tm=tm,
                              vmem_limit_bytes=cfg["vmem_limit_bytes"],
                              single_buffer_weights=True)
        out = jax.block_until_ready(out)
    except Exception:
        # Fallback: plain (double-buffered) weight/bias specs — the previously verified path.
        out = _highway_pallas(x2, w_stack, b_stack, tm=tm,
                              vmem_limit_bytes=cfg["vmem_limit_bytes"],
                              single_buffer_weights=False)

    if hp != h:
        out = out[:, :h]
    return out.reshape(orig_shape)


# ---------------------------------------------------------------------------
# Pure-JAX reference (PyTorch semantics, f32 everywhere)
# ---------------------------------------------------------------------------
def _reference_forward(x, params):
    orig_shape = x.shape
    x2 = x.reshape(-1, orig_shape[-1]).astype(jnp.float32)
    for layer in params:
        wt, bt = layer["transform"]
        wc, bc = layer["carry"]
        wf, bf = layer["fc"]
        t = jax.nn.sigmoid(x2 @ wt + bt)
        c = jax.nn.sigmoid(x2 @ wc + bc)
        f = x2 @ wf + bf
        x2 = jnp.maximum(t * f + c * x2, 0.0)
    return x2.reshape(orig_shape)


if __name__ == "__main__":
    # Small synthetic config: input_size=32 (instead of 500), n_layers=2,
    # activations shaped [batch=2, seq=8, hidden=32].
    input_size = 32
    n_layers = 2
    batch, seq = 2, 8

    key = jax.random.PRNGKey(0)
    key, kx = jax.random.split(key)
    x = jax.random.normal(kx, (batch, seq, input_size), jnp.float32)

    params = init_highway_params(key, input_size, n_layers, jnp.float32)
    w_stack, b_stack = pack_highway_params(params, input_size)   # bf16 weights, f32 biases

    out = highway_v2_forward(x, w_stack, b_stack)
    out = jax.block_until_ready(out)

    ref = _reference_forward(x, params)
    assert out.shape == x.shape
    # bf16 matmul inputs (f32 accumulation) vs. the pure-f32 reference: loosened tolerance.
    assert jnp.allclose(out, ref, atol=3e-2, rtol=3e-2), "mismatch vs reference"

    print("KERNEL_OK")
</pallas_src>

<mosaic_0001>
module attributes {stable_mosaic.version = 11 : i64} {
  func.func @_highway_kernel(%arg0: i32, %arg1: memref<8x128xf32, #tpu.memory_space<vmem>>, %arg2: memref<2x128x384xbf16, #tpu.memory_space<vmem>>, %arg3: memref<2x1x384xf32, #tpu.memory_space<vmem>>, %arg4: memref<8x128xf32, #tpu.memory_space<vmem>>) attributes {dimension_semantics = [#tpu.dimension_semantics<parallel>], iteration_bounds = array<i64: 2>, scalar_prefetch = 0 : i64, scratch_operands = 0 : i64, tpu.core_type = #tpu.core_type<tc>, window_params = [{transform_indices = @transform_0, window_bounds = array<i64: 8, 128>}, {pipeline_mode = #tpu.pipeline_mode<synchronous>, transform_indices = @transform_1, window_bounds = array<i64: 2, 128, 384>}, {pipeline_mode = #tpu.pipeline_mode<synchronous>, transform_indices = @transform_2, window_bounds = array<i64: 2, 1, 384>}, {transform_indices = @transform_3, window_bounds = array<i64: 8, 128>}]} {
    %c0 = arith.constant 0 : index
    %c0_0 = arith.constant 0 : index
    %0 = vector.load %arg1[%c0, %c0_0] : memref<8x128xf32, #tpu.memory_space<vmem>>, vector<8x128xf32>
    %c0_1 = arith.constant 0 : index
    %c0_2 = arith.constant 0 : index
    %c0_3 = arith.constant 0 : index
    %1 = vector.load %arg2[%c0_1, %c0_2, %c0_3] : memref<2x128x384xbf16, #tpu.memory_space<vmem>>, vector<1x128x384xbf16>
    %2 = vector.shape_cast %1 : vector<1x128x384xbf16> to vector<128x384xbf16>
    %3 = arith.truncf %0 : vector<8x128xf32> to vector<8x128xbf16>
    %cst = arith.constant dense<0.000000e+00> : vector<8x384xf32>
    %4 = tpu.matmul %3, %2, %cst {dimension_numbers = #tpu.dot_dimension_numbers<[1], [0], [0], [1], [0, 0, 1, 1], [], []>} : vector<8x128xbf16>, vector<128x384xbf16>, vector<8x384xf32> -> vector<8x384xf32>
    %c0_4 = arith.constant 0 : index
    %c0_5 = arith.constant 0 : index
    %c0_6 = arith.constant 0 : index
    %5 = vector.load %arg3[%c0_4, %c0_5, %c0_6] : memref<2x1x384xf32, #tpu.memory_space<vmem>>, vector<1x1x384xf32>
    %6 = vector.shape_cast %5 : vector<1x1x384xf32> to vector<1x384xf32>
    %7 = vector.broadcast %6 : vector<1x384xf32> to vector<8x384xf32>
    %8 = arith.addf %4, %7 : vector<8x384xf32>
    %9 = vector.extract_strided_slice %8 {offsets = [0, 0], sizes = [8, 128], strides = [1, 1]} : vector<8x384xf32> to vector<8x128xf32>
    %10 = arith.negf %9 : vector<8x128xf32>
    %11 = math.exp %10 : vector<8x128xf32>
    %cst_7 = arith.constant 1.000000e+00 : f32
    %12 = vector.broadcast %cst_7 : f32 to vector<8x128xf32>
    %13 = arith.addf %12, %11 : vector<8x128xf32>
    %14 = arith.divf %12, %13 : vector<8x128xf32>
    %15 = vector.extract_strided_slice %8 {offsets = [0, 128], sizes = [8, 128], strides = [1, 1]} : vector<8x384xf32> to vector<8x128xf32>
    %16 = arith.negf %15 : vector<8x128xf32>
    %17 = math.exp %16 : vector<8x128xf32>
    %cst_8 = arith.constant 1.000000e+00 : f32
    %18 = vector.broadcast %cst_8 : f32 to vector<8x128xf32>
    %19 = arith.addf %18, %17 : vector<8x128xf32>
    %20 = arith.divf %18, %19 : vector<8x128xf32>
    %21 = vector.extract_strided_slice %8 {offsets = [0, 256], sizes = [8, 128], strides = [1, 1]} : vector<8x384xf32> to vector<8x128xf32>
    %22 = arith.mulf %14, %21 : vector<8x128xf32>
    %23 = arith.mulf %20, %0 : vector<8x128xf32>
    %24 = arith.addf %22, %23 : vector<8x128xf32>
    %cst_9 = arith.constant 0.000000e+00 : f32
    %25 = vector.broadcast %cst_9 : f32 to vector<8x128xf32>
    %26 = arith.maximumf %24, %25 : vector<8x128xf32>
    %c1 = arith.constant 1 : index
    %c0_10 = arith.constant 0 : index
    %c0_11 = arith.constant 0 : index
    %27 = vector.load %arg2[%c1, %c0_10, %c0_11] : memref<2x128x384xbf16, #tpu.memory_space<vmem>>, vector<1x128x384xbf16>
    %28 = vector.shape_cast %27 : vector<1x128x384xbf16> to vector<128x384xbf16>
    %29 = arith.truncf %26 : vector<8x128xf32> to vector<8x128xbf16>
    %cst_12 = arith.constant dense<0.000000e+00> : vector<8x384xf32>
    %30 = tpu.matmul %29, %28, %cst_12 {dimension_numbers = #tpu.dot_dimension_numbers<[1], [0], [0], [1], [0, 0, 1, 1], [], []>} : vector<8x128xbf16>, vector<128x384xbf16>, vector<8x384xf32> -> vector<8x384xf32>
    %c1_13 = arith.constant 1 : index
    %c0_14 = arith.constant 0 : index
    %c0_15 = arith.constant 0 : index
    %31 = vector.load %arg3[%c1_13, %c0_14, %c0_15] : memref<2x1x384xf32, #tpu.memory_space<vmem>>, vector<1x1x384xf32>
    %32 = vector.shape_cast %31 : vector<1x1x384xf32> to vector<1x384xf32>
    %33 = vector.broadcast %32 : vector<1x384xf32> to vector<8x384xf32>
    %34 = arith.addf %30, %33 : vector<8x384xf32>
    %35 = vector.extract_strided_slice %34 {offsets = [0, 0], sizes = [8, 128], strides = [1, 1]} : vector<8x384xf32> to vector<8x128xf32>
    %36 = arith.negf %35 : vector<8x128xf32>
    %37 = math.exp %36 : vector<8x128xf32>
    %cst_16 = arith.constant 1.000000e+00 : f32
    %38 = vector.broadcast %cst_16 : f32 to vector<8x128xf32>
    %39 = arith.addf %38, %37 : vector<8x128xf32>
    %40 = arith.divf %38, %39 : vector<8x128xf32>
    %41 = vector.extract_strided_slice %34 {offsets = [0, 128], sizes = [8, 128], strides = [1, 1]} : vector<8x384xf32> to vector<8x128xf32>
    %42 = arith.negf %41 : vector<8x128xf32>
    %43 = math.exp %42 : vector<8x128xf32>
    %cst_17 = arith.constant 1.000000e+00 : f32
    %44 = vector.broadcast %cst_17 : f32 to vector<8x128xf32>
    %45 = arith.addf %44, %43 : vector<8x128xf32>
    %46 = arith.divf %44, %45 : vector<8x128xf32>
    %47 = vector.extract_strided_slice %34 {offsets = [0, 256], sizes = [8, 128], strides = [1, 1]} : vector<8x384xf32> to vector<8x128xf32>
    %48 = arith.mulf %40, %47 : vector<8x128xf32>
    %49 = arith.mulf %46, %26 : vector<8x128xf32>
    %50 = arith.addf %48, %49 : vector<8x128xf32>
    %cst_18 = arith.constant 0.000000e+00 : f32
    %51 = vector.broadcast %cst_18 : f32 to vector<8x128xf32>
    %52 = arith.maximumf %50, %51 : vector<8x128xf32>
    %c0_19 = arith.constant 0 : index
    %c0_20 = arith.constant 0 : index
    %53 = vector.load %arg4[%c0_19, %c0_20] : memref<8x128xf32, #tpu.memory_space<vmem>>, vector<8x128xf32>
    tpu.vector_store %arg4[%c0_19, %c0_20], %52 {strides = array<i32>} : memref<8x128xf32, #tpu.memory_space<vmem>>, vector<8x128xf32>,
    return
  }
  func.func @transform_0(%arg0: i32) -> (i32, i32) {
    %c0_i32 = arith.constant 0 : i32
    %c0_i32_0 = arith.constant 0 : i32
    return %arg0, %c0_i32 : i32, i32
  }
  func.func @transform_1(%arg0: i32) -> (i32, i32, i32) {
    %c0_i32 = arith.constant 0 : i32
    %c0_i32_0 = arith.constant 0 : i32
    %c0_i32_1 = arith.constant 0 : i32
    %c0_i32_2 = arith.constant 0 : i32
    return %c0_i32, %c0_i32_0, %c0_i32_1 : i32, i32, i32
  }
  func.func @transform_2(%arg0: i32) -> (i32, i32, i32) {
    %c0_i32 = arith.constant 0 : i32
    %c0_i32_0 = arith.constant 0 : i32
    %c0_i32_1 = arith.constant 0 : i32
    %c0_i32_2 = arith.constant 0 : i32
    return %c0_i32, %c0_i32_0, %c0_i32_1 : i32, i32, i32
  }
  func.func @transform_3(%arg0: i32) -> (i32, i32) {
    %c0_i32 = arith.constant 0 : i32
    %c0_i32_0 = arith.constant 0 : i32
    return %arg0, %c0_i32 : i32, i32
  }
}

module attributes {stable_mosaic.version = 11 : i64} {
  func.func @_highway_kernel(%arg0: i32, %arg1: memref<8x128xf32, #tpu.memory_space<vmem>>, %arg2: memref<2x128x384xbf16, #tpu.memory_space<vmem>>, %arg3: memref<2x1x384xf32, #tpu.memory_space<vmem>>, %arg4: memref<8x128xf32, #tpu.memory_space<vmem>>) attributes {dimension_semantics = [#tpu.dimension_semantics<parallel>], iteration_bounds = array<i64: 2>, scalar_prefetch = 0 : i64, scratch_operands = 0 : i64, tpu.core_type = #tpu.core_type<tc>, window_params = [{transform_indices = @transform_0, window_bounds = array<i64: 8, 128>}, {pipeline_mode = #tpu.pipeline_mode<synchronous>, transform_indices = @transform_1, window_bounds = array<i64: 2, 128, 384>}, {pipeline_mode = #tpu.pipeline_mode<synchronous>, transform_indices = @transform_2, window_bounds = array<i64: 2, 1, 384>}, {transform_indices = @transform_3, window_bounds = array<i64: 8, 128>}]} {
    %c0 = arith.constant 0 : index
    %c0_0 = arith.constant 0 : index
    %0 = vector.load %arg1[%c0, %c0_0] : memref<8x128xf32, #tpu.memory_space<vmem>>, vector<8x128xf32>
    %c0_1 = arith.constant 0 : index
    %c0_2 = arith.constant 0 : index
    %c0_3 = arith.constant 0 : index
    %1 = vector.load %arg2[%c0_1, %c0_2, %c0_3] : memref<2x128x384xbf16, #tpu.memory_space<vmem>>, vector<1x128x384xbf16>
    %2 = vector.shape_cast %1 : vector<1x128x384xbf16> to vector<128x384xbf16>
    %3 = arith.truncf %0 : vector<8x128xf32> to vector<8x128xbf16>
    %cst = arith.constant dense<0.000000e+00> : vector<8x384xf32>
    %4 = tpu.matmul %3, %2, %cst {dimension_numbers = #tpu.dot_dimension_numbers<[1], [0], [0], [1], [0, 0, 1, 1], [], []>} : vector<8x128xbf16>, vector<128x384xbf16>, vector<8x384xf32> -> vector<8x384xf32>
    %c0_4 = arith.constant 0 : index
    %c0_5 = arith.constant 0 : index
    %c0_6 = arith.constant 0 : index
    %5 = vector.load %arg3[%c0_4, %c0_5, %c0_6] : memref<2x1x384xf32, #tpu.memory_space<vmem>>, vector<1x1x384xf32>
    %6 = vector.shape_cast %5 : vector<1x1x384xf32> to vector<1x384xf32>
    %7 = vector.broadcast %6 : vector<1x384xf32> to vector<8x384xf32>
    %8 = arith.addf %4, %7 : vector<8x384xf32>
    %9 = vector.extract_strided_slice %8 {offsets = [0, 0], sizes = [8, 128], strides = [1, 1]} : vector<8x384xf32> to vector<8x128xf32>
    %10 = arith.negf %9 : vector<8x128xf32>
    %11 = math.exp %10 : vector<8x128xf32>
    %cst_7 = arith.constant 1.000000e+00 : f32
    %12 = vector.broadcast %cst_7 : f32 to vector<8x128xf32>
    %13 = arith.addf %12, %11 : vector<8x128xf32>
    %14 = arith.divf %12, %13 : vector<8x128xf32>
    %15 = vector.extract_strided_slice %8 {offsets = [0, 128], sizes = [8, 128], strides = [1, 1]} : vector<8x384xf32> to vector<8x128xf32>
    %16 = arith.negf %15 : vector<8x128xf32>
    %17 = math.exp %16 : vector<8x128xf32>
    %cst_8 = arith.constant 1.000000e+00 : f32
    %18 = vector.broadcast %cst_8 : f32 to vector<8x128xf32>
    %19 = arith.addf %18, %17 : vector<8x128xf32>
    %20 = arith.divf %18, %19 : vector<8x128xf32>
    %21 = vector.extract_strided_slice %8 {offsets = [0, 256], sizes = [8, 128], strides = [1, 1]} : vector<8x384xf32> to vector<8x128xf32>
    %22 = arith.mulf %14, %21 : vector<8x128xf32>
    %23 = arith.mulf %20, %0 : vector<8x128xf32>
    %24 = arith.addf %22, %23 : vector<8x128xf32>
    %cst_9 = arith.constant 0.000000e+00 : f32
    %25 = vector.broadcast %cst_9 : f32 to vector<8x128xf32>
    %26 = arith.maximumf %24, %25 : vector<8x128xf32>
    %c1 = arith.constant 1 : index
    %c0_10 = arith.constant 0 : index
    %c0_11 = arith.constant 0 : index
    %27 = vector.load %arg2[%c1, %c0_10, %c0_11] : memref<2x128x384xbf16, #tpu.memory_space<vmem>>, vector<1x128x384xbf16>
    %28 = vector.shape_cast %27 : vector<1x128x384xbf16> to vector<128x384xbf16>
    %29 = arith.truncf %26 : vector<8x128xf32> to vector<8x128xbf16>
    %cst_12 = arith.constant dense<0.000000e+00> : vector<8x384xf32>
    %30 = tpu.matmul %29, %28, %cst_12 {dimension_numbers = #tpu.dot_dimension_numbers<[1], [0], [0], [1], [0, 0, 1, 1], [], []>} : vector<8x128xbf16>, vector<128x384xbf16>, vector<8x384xf32> -> vector<8x384xf32>
    %c1_13 = arith.constant 1 : index
    %c0_14 = arith.constant 0 : index
    %c0_15 = arith.constant 0 : index
    %31 = vector.load %arg3[%c1_13, %c0_14, %c0_15] : memref<2x1x384xf32, #tpu.memory_space<vmem>>, vector<1x1x384xf32>
    %32 = vector.shape_cast %31 : vector<1x1x384xf32> to vector<1x384xf32>
    %33 = vector.broadcast %32 : vector<1x384xf32> to vector<8x384xf32>
    %34 = arith.addf %30, %33 : vector<8x384xf32>
    %35 = vector.extract_strided_slice %34 {offsets = [0, 0], sizes = [8, 128], strides = [1, 1]} : vector<8x384xf32> to vector<8x128xf32>
    %36 = arith.negf %35 : vector<8x128xf32>
    %37 = math.exp %36 : vector<8x128xf32>
    %cst_16 = arith.constant 1.000000e+00 : f32
    %38 = vector.broadcast %cst_16 : f32 to vector<8x128xf32>
    %39 = arith.addf %38, %37 : vector<8x128xf32>
    %40 = arith.divf %38, %39 : vector<8x128xf32>
    %41 = vector.extract_strided_slice %34 {offsets = [0, 128], sizes = [8, 128], strides = [1, 1]} : vector<8x384xf32> to vector<8x128xf32>
    %42 = arith.negf %41 : vector<8x128xf32>
    %43 = math.exp %42 : vector<8x128xf32>
    %cst_17 = arith.constant 1.000000e+00 : f32
    %44 = vector.broadcast %cst_17 : f32 to vector<8x128xf32>
    %45 = arith.addf %44, %43 : vector<8x128xf32>
    %46 = arith.divf %44, %45 : vector<8x128xf32>
    %47 = vector.extract_strided_slice %34 {offsets = [0, 256], sizes = [8, 128], strides = [1, 1]} : vector<8x384xf32> to vector<8x128xf32>
    %48 = arith.mulf %40, %47 : vector<8x128xf32>
    %49 = arith.mulf %46, %26 : vector<8x128xf32>
    %50 = arith.addf %48, %49 : vector<8x128xf32>
    %cst_18 = arith.constant 0.000000e+00 : f32
    %51 = vector.broadcast %cst_18 : f32 to vector<8x128xf32>
    %52 = arith.maximumf %50, %51 : vector<8x128xf32>
    %c0_19 = arith.constant 0 : index
    %c0_20 = arith.constant 0 : index
    %53 = vector.load %arg4[%c0_19, %c0_20] : memref<8x128xf32, #tpu.memory_space<vmem>>, vector<8x128xf32>
    tpu.vector_store %arg4[%c0_19, %c0_20], %52 {strides = array<i32>} : memref<8x128xf32, #tpu.memory_space<vmem>>, vector<8x128xf32>,
    return
  }
  func.func @transform_0(%arg0: i32) -> (i32, i32) {
    %c0_i32 = arith.constant 0 : i32
    %c0_i32_0 = arith.constant 0 : i32
    return %arg0, %c0_i32 : i32, i32
  }
  func.func @transform_1(%arg0: i32) -> (i32, i32, i32) {
    %c0_i32 = arith.constant 0 : i32
    %c0_i32_0 = arith.constant 0 : i32
    %c0_i32_1 = arith.constant 0 : i32
    %c0_i32_2 = arith.constant 0 : i32
    return %c0_i32, %c0_i32_0, %c0_i32_1 : i32, i32, i32
  }
  func.func @transform_2(%arg0: i32) -> (i32, i32, i32) {
    %c0_i32 = arith.constant 0 : i32
    %c0_i32_0 = arith.constant 0 : i32
    %c0_i32_1 = arith.constant 0 : i32
    %c0_i32_2 = arith.constant 0 : i32
    return %c0_i32, %c0_i32_0, %c0_i32_1 : i32, i32, i32
  }
  func.func @transform_3(%arg0: i32) -> (i32, i32) {
    %c0_i32 = arith.constant 0 : i32
    %c0_i32_0 = arith.constant 0 : i32
    return %arg0, %c0_i32 : i32, i32
  }
}

</mosaic_0001>

<bundles_post_ra>
// kernel: _highway_pallas.1
= control target key start
LH: loop header
LB: loop body
LE: loop exit
PB: predicated region body
PF: predicated region fallthrough
CT: control target
= control target key end

     0   :  { %8 = vsyncpa [#allocation3], 0  ;;  %s1531_s0 = inlined_call_operand.hbm [shape: f32[16,128], index: 0, kind: input, shape index: {}]   ;;  %s1532_s1 = inlined_call_operand.hbm [shape: bf16[2,128,384], index: 1, kind: input, shape index: {}]   ;;  %s1533_s2 = inlined_call_operand.hbm [shape: f32[2,1,384], index: 2, kind: input, shape index: {}]   ;;  %s1534_s3 = inlined_call_operand.hbm [shape: f32[16,128], index: 3, kind: output, shape index: {}]  }
   0x1   :  { %10 = vsyncpa [#allocation3 + $0x1], 0 }
   0x2   :  { %11 = vsyncpa [#allocation6], 0 }
   0x3   :  { %12 = vsyncpa [#allocation4], 0 }
   0x4   :  { %14 = vsyncpa [#allocation4 + $0x1], 0  ;;  %s1334_s12 = smov 0   ;;  %s1336_s13 = smov 0  }
   0x5   :  { %s1338_s14 = smov 0   ;;  %s1340_s15 = smov 0  }
   0x6 LB: > { %s1355_s16 = sadd.s32 4294967295, %s1301_s15   ;;  %s873_s17 = sadd.s32 4294967294, %s1301_s15   ;;  %s1301_s15 = sphi %s1340_s15, %s1556_s15   ;;  %s1297_s14 = sphi %s1338_s14, %s1555_s14   ;;  %s1293_s13 = sphi %s1336_s13, %s1554_s13   ;;  %s1289_s12 = sphi %s1334_s12, %s1553_s12  }
   0x7   : > { %p40_p0 = scmp.ne.s32.totalorder %s1293_s13, %s1289_s12  ;;  %p1535_p1 = scmp.eq.s32.totalorder %s1355_s16, 0 }
   0x8   : > { %p112_p3 = scmp.eq.s32.totalorder %s873_s17, 1  ;;  %p874_p5 = scmp.ge.s32.totalorder %s1301_s15, 1 }
   0x9   : > { %p1364_p4 = por %p1535_p1, %p40_p0  ;;  %p119_p7 = scmp.lt.s32.totalorder %s1301_s15, 3 }
   0xa   : > { %p1369_p6 = por %p112_p3, %p40_p0  ;;  %s1303_s21 = smov [#allocation5]  }
   0xb   : > { %s1539_s18 = scalar_select %p1364_p4, 1, 0 }
   0xc   : > { %s1540_s19 = scalar_select %p1369_p6, 1, 0 }
   0xd   : > { %p1374_p8 = pnand %p874_p5, %p119_p7  ;;  %s131_s22 = sshll.u32 %s1303_s21, 4  ;;  %s132_s22 = int_to_ptr.vmem [resolvable:$true] %s131_s22 }
   0xe   : > { %s1304_s24 = smov [#allocation7]   ;;  %s1164_s26 = scalar_lea.vmem %s132_s22, 6144 }
   0xf   : > { %s1541_s20 = scalar_select %p1374_p8, 1, 0 }
  0x10   : > { %p1011_p9 = pneg %p1374_p8  ;;  %s144_s25 = sshll.u32 %s1304_s24, 4  ;;  %s145_s25 = int_to_ptr.vmem [resolvable:$true] %s144_s25 }
  0x11   : > { %p1165_p13 = scmp.ne.s32.totalorder %s132_s22, %s1164_s26  ;;  %p1172_p5 = scmp.lt.s32.totalorder %s132_s22, %s132_s22 }
  0x12   : > { %p1383_p11 = pnand %p1011_p9, %p1535_p1  ;;  %p1173_p7 = scmp.lt.s32.totalorder %s1164_s26, %s1164_s26 }
  0x14   : > { %p1155_p12 = pneg %p1383_p11  ;;  %p1174_p10 = por %p1173_p7, %p1172_p5 }
  0x16   : > { %p1167_p0 = pnand %p1165_p13, %p1155_p12 }
  0x18   : > { %p1168_p3 = pneg %p1167_p0 }
  0x1a   : > { %p1175_p9 = pnand %p1174_p10, %p1168_p3 }
  0x1c   : > { %1178 = shalt.err (!%p1175_p9)
}
  0x1d   : > { %s1305_s27 = smov 192   ;;  %s1306_s28 = smov 12  }
  0x1e   : > { %1014 = dma.hbm_to_vmem [thread:$0]  (!%p1383_p11), %s1532_s1, 6144, %s132_s22, [#allocation6], %s1305_s27, %s1305_s27, %s1306_s28  }
  0x1f   : > { %s1190_s4 = scalar_lea.vmem %s145_s25, 96  ;;  %p1198_p2 = scmp.lt.s32.totalorder %s145_s25, %s145_s25 }
  0x20   : > { %p1191_p1 = scmp.ne.s32.totalorder %s145_s25, %s1190_s4  ;;  %p1199_p6 = scmp.lt.s32.totalorder %s1190_s4, %s1190_s4 }
  0x22   : > { %p1193_p13 = pnand %p1191_p1, %p1155_p12  ;;  %p1200_p5 = por %p1199_p6, %p1198_p2 }
  0x24   : > { %p1194_p0 = pneg %p1193_p13 }
  0x26   : > { %p1201_p10 = pnand %p1200_p5, %p1194_p0 }
  0x28   : > { %1204 = shalt.err (!%p1201_p10)
}
  0x29   : > { %s1307_s5 = smov 48   ;;  %s1308_s6 = smov 3  }
  0x2a   : > { %1017 = dma.hbm_to_vmem [thread:$0]  (!%p1383_p11), %s1533_s2, 96, %s145_s25, [#allocation6], %s1307_s5, %s1307_s5, %s1308_s6  }
  0x2b   : > { %s1406_s9 = sadd.s32 1, %s1301_s15   ;;  %s27_s11 = sadd.s32 1, %s1297_s14 }
  0x2c   : > { %s24_s10 = ssub.s32 %s1301_s15, %s1406_s9  ;;  %p34_p2 = scmp.ne.s32.totalorder %s1297_s14, %s1293_s13 }
  0x2d   : > { %p25_p1 = scmp.eq.s32.totalorder %s24_s10, 0  ;;  %p35_p6 = scmp.eq.s32.totalorder %s1301_s15, 0 }
  0x2e   : > { %p1543_p3 = scmp.eq.s32.totalorder %s1355_s16, 1  ;;  %p1028_p9 = scmp.lt.s32.totalorder %s1301_s15, 2 }
  0x2f   : > { %s1415_s17 = scalar_select %p25_p1, %s1297_s14, %s27_s11  }
  0x30   : > { %p36_p12 = por %p35_p6, %p34_p2  ;;  %p1419_p7 = por %p1543_p3, %p34_p2 }
  0x31   : > { %s158_s22 = sand.u32 1, %s1297_s14   ;;  %s879_s24 = sshll.u32 %s1301_s15, 7 }
  0x32   : > { %s1544_s21 = scalar_select %p1419_p7, 1, 0 }
  0x33   : > { %s878_s23 = sshll.u32 %s158_s22, 3  ;;  %s1429_s27 = scalar_lea.hbm %s1531_s0, %s879_s24 }
  0x34   : > { %s162_s28 = scalar_lea.vmem [#allocation2], %s878_s23  ;;  %p1431_p11 = pnand %p1028_p9, %p36_p12 }
  0x35   : > { %s169_s29 = sshll.u32 %s162_s28, 4  ;;  %s159_s4 = scalar_lea.sflag [#allocation3], %s158_s22  ;;  %s170_s29 = int_to_ptr.vmem [resolvable:$true] %s169_s29 }
  0x36   : > { %s1205_s5 = scalar_lea.hbm %s1429_s27, 128  ;;  %p1207_p0 = pneg %p1431_p11 }
  0x37   : > { %p1206_p13 = scmp.ne.s32.totalorder %s1429_s27, %s1205_s5  ;;  %s1210_s8 = scalar_lea.hbm %s1531_s0, 256 }
  0x38   : > { %p1211_p1 = scmp.lt.s32.totalorder %s1429_s27, %s1531_s0  ;;  %p1212_p2 = scmp.lt.s32.totalorder %s1210_s8, %s1205_s5 }
  0x39   : > { %p1208_p5 = pnand %p1207_p0, %p1206_p13 }
  0x3a   : > { %p1213_p6 = por %p1212_p2, %p1211_p1 }
  0x3b   : > { %p1209_p10 = pneg %p1208_p5 }
  0x3d   : > { %p1214_p12 = pnand %p1213_p6, %p1209_p10 }
  0x3f   : > { %1217 = shalt.err (!%p1214_p12)
}
  0x40   : > { %s1218_s23 = scalar_lea.vmem %s170_s29, 128  ;;  %s1309_s22 = smov [#allocation2]  }
  0x41   : > { %p1219_p3 = scmp.ne.s32.totalorder %s170_s29, %s1218_s23  ;;  %s1223_s24 = sshll.u32 %s1309_s22, 4  ;;  %s1224_s24 = int_to_ptr.vmem [resolvable:$false] %s1223_s24 }
  0x42   : > { %s1225_s25 = scalar_lea.vmem %s1224_s24, 256  ;;  %p1226_p13 = scmp.lt.s32.totalorder %s170_s29, %s1224_s24 }
  0x43   : > { %p1221_p9 = pnand %p1219_p3, %p1207_p0  ;;  %p1227_p5 = scmp.lt.s32.totalorder %s1225_s25, %s1218_s23 }
  0x45   : > { %p1222_p7 = pneg %p1221_p9  ;;  %p1228_p4 = por %p1227_p5, %p1226_p13 }
  0x47   : > { %p1229_p8 = pnand %p1228_p4, %p1222_p7 }
  0x49   : > { %1232 = shalt.err (!%p1229_p8)
}
  0x4a   : > { %1021 = dma.hbm_to_vmem [thread:$0]  (!%p1431_p11), %s1429_s27, 128, %s170_s29, %s159_s4  }
  0x4b   : > { %p1546_p10 = scmp.ne.s32.totalorder %s1541_s20, 0 }
  0x4c   : > { %s1452_s26 = sand.u32 (!%p1546_p10), 1, %s1293_s13   ;;  %p1547_p4 = scmp.ne.s32.totalorder (!%p1546_p10), %s1539_s18, 0 }
  0x4d   : > { %178 = sbr.rel (%p1546_p10) target bundleno = 605 (0x25d), region = 32  ;;  %s881_s28 = sshll.u32 (!%p1546_p10), %s1452_s26, 3 }
  0x4e   : > { %s181_s5 = scalar_lea.sflag (!%p1546_p10), [#allocation3], %s1452_s26  ;;  %s1458_s6 = scalar_lea.vmem (!%p1546_p10), [#allocation2], %s881_s28 }
  0x52   : > { %1276 = dma.done.wait (%p1547_p4), %s181_s5, 128  }
  0x53   : > { %1278 = vsyncadd (%p1547_p4), %s181_s5, 4294967168  ;;  %p1548_p8 = scmp.eq.s32.totalorder %s1355_s16, 0 }
  0x55   : > { %1280 = dma.done.wait (%p1548_p8), [#allocation6], 6240   ;;  %p1549_p7 = pmov %p1548_p8 }
  0x56   : > { %v1310_v0 = vmov 0.0   ;;  %v1311_v1 = vmov 0   ;;  %vm1312_vm0 = vmmov 0   ;;  %v1073_v2 = vld [vmem:[#allocation5 + $0xac] ss:$12 sps:$4 sm:$0xff]   ;;  %v252_v52 = vlaneseq  ;;  %s938_s18 = sshll.u32 %s1355_s16, 7 }
  0x57   : > { %1282 = vsyncadd (%p1549_p7), [#allocation6], 4294961056  ;;  %959 = vmatprep.subr.bf16.mxu1 %v1310_v0  ;;  %427 = vmatprep.mubr.bf16.mxu0 %v1311_v1  ;;  %v1075_v3 = vld [vmem:[#allocation5 + $0xa8] ss:$12 sps:$4 sm:$0xff]   ;;  %v1078_v5 = vld [vmem:[#allocation5 + $0x90] ss:$12 sps:$4 sm:$0xff]   ;;  %s782_s4 = scalar_lea.hbm %s1534_s3, %s938_s18 }
  0x58   : > { %975 = vmatprep.mubr.msk.bf16.mxu1 %vm1312_vm0, %v1310_v0  ;;  %395 = vmatprep.subr.bf16.mxu0 %v1073_v2  ;;  %v1076_v4 = vld [vmem:[#allocation5 + $0x94] ss:$12 sps:$4 sm:$0xff]   ;;  %v1079_v6 = vld [vmem:[#allocation5 + $0x7c] ss:$12 sps:$4 sm:$0xff]   ;;  %v1081_v7 = vld [vmem:[#allocation5 + $0x78] ss:$12 sps:$4 sm:$0xff]  }
  0x59   : > { %396 = vmatpush1.bf16.msra.mxu0 %v1075_v3  ;;  %v1082_v8 = vld [vmem:[#allocation5 + $0x64] ss:$12 sps:$4 sm:$0xff]   ;;  %v1084_v9 = vld [vmem:[#allocation5 + $0x60] ss:$12 sps:$4 sm:$0xff]   ;;  %v1087_v13 = vld [vmem:[#allocation5 + $0x48] ss:$12 sps:$4 sm:$0xff]  }
  0x5a   : > { %397 = vmatprep.subr.bf16.mxu0 %v1076_v4  ;;  %v1097_v10 = vld [vmem:[#allocation5 + $0xb0] ss:$12 sps:$4 sm:$0xff]   ;;  %v1085_v11 = vld [vmem:[#allocation5 + $0x4c] ss:$12 sps:$4 sm:$0xff]   ;;  %v1088_v14 = vld [vmem:[#allocation5 + $0x34] ss:$12 sps:$4 sm:$0xff]  }
  0x5b   : > { %960 = vmatpush3.bf16.msra.mxu1 %v1097_v10  ;;  %v1098_v12 = vld [vmem:[#allocation5 + $0x98] ss:$12 sps:$4 sm:$0xff]   ;;  %v1090_v15 = vld [vmem:[#allocation5 + $0x30] ss:$12 sps:$4 sm:$0xff]   ;;  %v1099_v16 = vld [vmem:[#allocation5 + $0x80] ss:$12 sps:$4 sm:$0xff]  }
  0x5c   : > { %961 = vmatprep.subr.bf16.mxu1 %v1310_v0  ;;  %v1091_v17 = vld [vmem:[#allocation5 + $0x1c] ss:$12 sps:$4 sm:$0xff]   ;;  %v1093_v19 = vld [vmem:[#allocation5 + $0x18] ss:$12 sps:$4 sm:$0xff]   ;;  %v1096_v22 = vld [vmem:[#allocation5] ss:$12 sps:$4 sm:$0xff]  }
  0x5d   : > { %398 = vmatpush1.bf16.msra.mxu0 %v1078_v5  ;;  %v1100_v18 = vld [vmem:[#allocation5 + $0x68] ss:$12 sps:$4 sm:$0xff]   ;;  %v1094_v20 = vld [vmem:[#allocation5 + $0x4] ss:$12 sps:$4 sm:$0xff]   ;;  %v1103_v26 = vld [vmem:[#allocation5 + $0x20] ss:$12 sps:$4 sm:$0xff]  }
  0x5e   : > { %399 = vmatprep.subr.bf16.mxu0 %v1079_v6  ;;  %v1101_v21 = vld [vmem:[#allocation5 + $0x50] ss:$12 sps:$4 sm:$0xff]   ;;  %v1102_v24 = vld [vmem:[#allocation5 + $0x38] ss:$12 sps:$4 sm:$0xff]   ;;  %v1104_v27 = vld [vmem:[#allocation5 + $0x8] ss:$12 sps:$4 sm:$0xff]  }
  0x5f   : > { %962 = vmatpush3.bf16.msra.mxu1 %v1098_v12  ;;  %v1475_v23 = vld [vmem:[%s1458_s6] sm:$0xff]  ;;  %v1116_v36 = vld [vmem:[#allocation5 + $0x140] ss:$12 sps:$4 sm:$0xff]   ;;  %v253_v53 = vshrl.u32 %v252_v52, 7  ;;  %s214_s20 = scalar_lea.vmem [#allocation8], %s881_s28  ;;  %s771_s7 = scalar_lea.sflag [#allocation4], %s1452_s26 }
  0x60   : > { %963 = vmatprep.subr.bf16.mxu1 %v1310_v0  ;;  %v249_v25 = vpack.c.bf16 %v1475_v23, %v1475_v23  ;;  %v1107_v28 = vld [vmem:[#allocation5 + $0x16c] ss:$12 sps:$4 sm:$0xff]   ;;  %v1105_v29 = vld [vmem:[#allocation5 + $0x168] ss:$12 sps:$4 sm:$0xff]   ;;  %v1108_v30 = vld [vmem:[#allocation5 + $0x170] ss:$12 sps:$4 sm:$0xff]  }
  0x61   : > { %400 = vmatpush1.bf16.msra.mxu0 %v1081_v7  ;;  %v1111_v31 = vld [vmem:[#allocation5 + $0x154] ss:$12 sps:$4 sm:$0xff]   ;;  %v1109_v32 = vld [vmem:[#allocation5 + $0x150] ss:$12 sps:$4 sm:$0xff]   ;;  %v1112_v33 = vld [vmem:[#allocation5 + $0x158] ss:$12 sps:$4 sm:$0xff]  }
  0x62   : > { %401 = vmatprep.subr.bf16.mxu0 %v1082_v8  ;;  %v1115_v34 = vld [vmem:[#allocation5 + $0x13c] ss:$12 sps:$4 sm:$0xff]   ;;  %v1113_v35 = vld [vmem:[#allocation5 + $0x138] ss:$12 sps:$4 sm:$0xff]   ;;  %v1117_v37 = vld [vmem:[#allocation5 + $0x120] ss:$12 sps:$4 sm:$0xff]  }
  0x63   : > { %964 = vmatpush3.bf16.msra.mxu1 %v1099_v16  ;;  %v1119_v38 = vld [vmem:[#allocation5 + $0x124] ss:$12 sps:$4 sm:$0xff]   ;;  %v1120_v39 = vld [vmem:[#allocation5 + $0x128] ss:$12 sps:$4 sm:$0xff]   ;;  %v1123_v40 = vld [vmem:[#allocation5 + $0x10c] ss:$12 sps:$4 sm:$0xff]  }
  0x64   : > { %965 = vmatprep.subr.bf16.mxu1 %v1310_v0  ;;  %v1121_v41 = vld [vmem:[#allocation5 + $0x108] ss:$12 sps:$4 sm:$0xff]   ;;  %v1124_v42 = vld [vmem:[#allocation5 + $0x110] ss:$12 sps:$4 sm:$0xff]   ;;  %v1128_v45 = vld [vmem:[#allocation5 + $0xf8] ss:$12 sps:$4 sm:$0xff]  }
  0x65   : > { %402 = vmatpush1.bf16.msra.mxu0 %v1084_v9  ;;  %v1127_v43 = vld [vmem:[#allocation5 + $0xf4] ss:$12 sps:$4 sm:$0xff]   ;;  %v1125_v44 = vld [vmem:[#allocation5 + $0xf0] ss:$12 sps:$4 sm:$0xff]   ;;  %v1129_v47 = vld [vmem:[#allocation5 + $0xd8] ss:$12 sps:$4 sm:$0xff]  }
  0x66   : > { %403 = vmatprep.subr.bf16.mxu0 %v1085_v11  ;;  %v1131_v46 = vld [vmem:[#allocation5 + $0xdc] ss:$12 sps:$4 sm:$0xff]   ;;  %v1132_v48 = vld [vmem:[#allocation5 + $0xe0] ss:$12 sps:$4 sm:$0xff]   ;;  %v1135_v49 = vld [vmem:[#allocation5 + $0xc4] ss:$12 sps:$4 sm:$0xff]  }
  0x67   : > { %966 = vmatpush3.bf16.msra.mxu1 %v1100_v18  ;;  %v1133_v50 = vld [vmem:[#allocation5 + $0xc0] ss:$12 sps:$4 sm:$0xff]   ;;  %v1136_v51 = vld [vmem:[#allocation5 + $0xc8] ss:$12 sps:$4 sm:$0xff]   ;;  %v254_v54 = vsub.s32 0, %v253_v53  ;;  %v258_v56 = vsub.s32 1, %v253_v53 }
  0x68   : > { %967 = vmatprep.subr.bf16.mxu1 %v1310_v0  ;;  %v250_v55 = vld [vmem:[#allocation7] sm:$0x7]  ;;  %v262_v11 = vsub.s32 2, %v253_v53  ;;  %s784_s27 = sshll.u32 %s214_s20, 4  ;;  %p1550_p0 = scmp.ne.s32.totalorder %s1544_s21, 0  ;;  %s785_s27 = int_to_ptr.vmem [resolvable:$true] %s784_s27 }
  0x69   : > { %404 = vmatpush1.bf16.msra.mxu0 %v1087_v13  ;;  %v255_v57 = vrot.slane %v250_v55, %v254_v54  ;;  %v259_v58 = vrot.slane %v250_v55, %v258_v56  ;;  %s1233_s8 = scalar_lea.vmem %s785_s27, 128  ;;  %s1313_s10 = smov [#allocation8]  }
  0x6a   : > { %405 = vmatprep.subr.bf16.mxu0 %v1088_v14  ;;  %v263_v12 = vrot.slane %v250_v55, %v262_v11  ;;  %p1234_p11 = scmp.ne.s32.totalorder %s785_s27, %s1233_s8  ;;  %s1237_s11 = sshll.u32 %s1313_s10, 4  ;;  %s1238_s11 = int_to_ptr.vmem [resolvable:$false] %s1237_s11 }
  0x6b   : > { %968 = vmatpush3.bf16.msra.mxu1 %v1101_v21  ;;  %v527_v21 = vld [vmem:[#allocation7 + $0x3] sm:$0x7]  ;;  %s1239_s16 = scalar_lea.vmem %s1238_s11, 256  ;;  %p1240_p6 = scmp.lt.s32.totalorder %s785_s27, %s1238_s11 }
  0x6c   : > { %969 = vmatprep.subr.bf16.mxu1 %v1310_v0  ;;  %p1235_p1 = pnand %p1234_p11, %p1550_p0  ;;  %p1241_p12 = scmp.lt.s32.totalorder %s1239_s16, %s1233_s8 }
  0x6d   : > { %406 = vmatpush1.bf16.msra.mxu0 %v1090_v15 }
  0x6e   : > { %407 = vmatprep.subr.bf16.mxu0 %v1091_v17  ;;  %p1236_p2 = pneg %p1235_p1  ;;  %p1242_p3 = por %p1241_p12, %p1240_p6 }
  0x6f   : > { %970 = vmatpush3.bf16.msra.mxu1 %v1102_v24  ;;  %v536_v24 = vrot.slane %v527_v21, %v258_v56 }
  0x70   : > { %971 = vmatprep.subr.bf16.mxu1 %v1310_v0  ;;  %p1243_p9 = pnand %p1242_p3, %p1236_p2 }
  0x71   : > { %408 = vmatpush1.bf16.msra.mxu0 %v1093_v19 }
  0x72   : > { %409 = vmatprep.subr.bf16.mxu0 %v1094_v20 }
  0x73   : > { %972 = vmatpush3.bf16.msra.mxu1 %v1103_v26 }
  0x74   : > { %973 = vmatprep.subr.bf16.mxu1 %v1310_v0 }
  0x75   : > { %410 = vmatpush1.bf16.msra.mxu0 %v1096_v22  ;;  %v532_v22 = vrot.slane %v527_v21, %v254_v54 }
  0x76   : > { %672 = vmatprep.subr.bf16.mxu0 %v1107_v28 }
  0x77   : > { %974 = vmatpush3.bf16.msra.mxu1 %v1104_v27 }
  0x78   : > { %428 = vmatmul.mubr.bf16.vlgmr.msra.gmra.mxu0 %v249_v25  ;;  %979 = vmatprep.subr.bf16.mxu1 %v1310_v0 }
  0x79   : > { %704 = vmatprep.mubr.bf16.mxu0 %v1311_v1  ;;  %673 = vmatpush1.bf16.msra.mxu0 %v1105_v29 }
  0x7a   : > { %976 = vmatmul.mubr.bf16.vlgmr.msra.gmra.mxu1 %v249_v25  ;;  %674 = vmatprep.subr.bf16.mxu0 %v1111_v31 }
  0x7b   : > { %995 = vmatprep.mubr.msk.bf16.mxu1 %vm1312_vm0, %v1310_v0  ;;  %980 = vmatpush3.bf16.msra.mxu1 %v1108_v30 }
  0x7c   : > { %981 = vmatprep.subr.bf16.mxu1 %v1310_v0 }
  0x7d   : > { %675 = vmatpush1.bf16.msra.mxu0 %v1109_v32 }
  0x7e   : > { %676 = vmatprep.subr.bf16.mxu0 %v1115_v34 }
  0x7f   : > { %982 = vmatpush3.bf16.msra.mxu1 %v1112_v33 }
  0x80   : > { %983 = vmatprep.subr.bf16.mxu1 %v1310_v0 }
  0x81   : > { %677 = vmatpush1.bf16.msra.mxu0 %v1113_v35 }
  0x82   : > { %678 = vmatprep.subr.bf16.mxu0 %v1119_v38 }
  0x83   : > { %984 = vmatpush3.bf16.msra.mxu1 %v1116_v36 }
  0x84   : > { %985 = vmatprep.subr.bf16.mxu1 %v1310_v0 }
  0x85   : > { %679 = vmatpush1.bf16.msra.mxu0 %v1117_v37 }
  0x86   : > { %680 = vmatprep.subr.bf16.mxu0 %v1123_v40  ;;  %v540_v40 = vrot.slane %v527_v21, %v262_v11 }
  0x87   : > { %986 = vmatpush3.bf16.msra.mxu1 %v1120_v39 }
  0x88   : > { %987 = vmatprep.subr.bf16.mxu1 %v1310_v0 }
  0x89   : > { %681 = vmatpush1.bf16.msra.mxu0 %v1121_v41 }
  0x8a   : > { %682 = vmatprep.subr.bf16.mxu0 %v1127_v43 }
  0x8b   : > { %988 = vmatpush3.bf16.msra.mxu1 %v1124_v42 }
  0x8c   : > { %989 = vmatprep.subr.bf16.mxu1 %v1310_v0 }
  0x8d   : > { %683 = vmatpush1.bf16.msra.mxu0 %v1125_v44 }
  0x8e   : > { %684 = vmatprep.subr.bf16.mxu0 %v1131_v46 }
  0x8f   : > { %990 = vmatpush3.bf16.msra.mxu1 %v1128_v45 }
  0x90   : > { %991 = vmatprep.subr.bf16.mxu1 %v1310_v0 }
  0x91   : > { %685 = vmatpush1.bf16.msra.mxu0 %v1129_v47 }
  0x92   : > { %686 = vmatprep.subr.bf16.mxu0 %v1135_v49 }
  0x93   : > { %992 = vmatpush3.bf16.msra.mxu1 %v1132_v48 }
  0x94   : > { %993 = vmatprep.subr.bf16.mxu1 %v1310_v0 }
  0x95   : > { %687 = vmatpush1.bf16.msra.mxu0 %v1133_v50 }
  0x97   : > { %994 = vmatpush3.bf16.msra.mxu1 %v1136_v51 }
 0x138   : > { %v429_v59 = vpop.f32.mrf.mxu0 }
 0x139   : > { %v430_v60 = vadd.f32 %v429_v59, %v255_v57 }
 0x13a   : > { %v431_v61 = vpop.f32.mrf.mxu0  ;;  %v470_v3 = vpop.f32.mrf.mxu1 }
 0x13b   : > { %v909_v62 = vmul.f32 -1.442695, %v430_v60  ;;  %v432_v63 = vadd.f32 %v431_v61, %v259_v58  ;;  %v471_v13 = vadd.f32 %v470_v3, %v263_v12 }
 0x13c   : > { %v433_v1 = vpop.f32.mrf.mxu0  ;;  %v977_v4 = vpop.f32.mrf.mxu1 }
 0x13d   : > { %1137 = vpow2.f32 %v909_v62  ;;  %v910_v0 = vmul.f32 -1.442695, %v432_v63 }
 0x13e   : > { %v434_v2 = vpop.f32.mrf.mxu0  ;;  %v473_v5 = vpop.f32.mrf.mxu1 }
 0x13f   : > { %1139 = vpow2.f32 %v910_v0 }
 0x140   : > { %v978_v6 = vpop.f32.mrf.mxu1 }
 0x14a   : > { %v1138_v7 = vpop.eup %1137 }
 0x14b   : > { %v479_v8 = vadd.f32 1.0, %v1138_v7 }
 0x14c   : > { %v1140_v9 = vpop.eup %1139 }
 0x14d   : > { %1141 = vrcp.f32 %v479_v8  ;;  %v485_v10 = vadd.f32 1.0, %v1140_v9 }
 0x14f   : > { %1143 = vrcp.f32 %v485_v10 }
 0x15a   : > { %v1142_v14 = vpop.eup %1141 }
 0x15b   : > { %v488_v16 = vmul.f32 %v1142_v14, %v471_v13 }
 0x15c   : > { %v1144_v15 = vpop.eup %1143 }
 0x15d   : > { %v489_v17 = vmul.f32 %v1144_v15, %v1475_v23 }
 0x15f   : > { %v490_v18 = vadd.f32 %v489_v17, %v488_v16 }
 0x161   : > { %v491_v19 = vmax.f32 %v490_v18, 0.0 }
 0x163   : > { %v525_v20 = vpack.c.bf16 %v491_v19, %v491_v19 }
 0x165   : > { %705 = vmatmul.mubr.bf16.vlgmr.msra.gmra.mxu0 %v525_v20  ;;  %996 = vmatmul.mubr.bf16.vlgmr.msra.gmra.mxu1 %v525_v20 }
 0x225   : > { %v706_v25 = vpop.f32.mrf.mxu0  ;;  %v747_v26 = vpop.f32.mrf.mxu1 }
 0x226   : > { %v707_v27 = vadd.f32 %v706_v25, %v532_v22  ;;  %v748_v42 = vadd.f32 %v747_v26, %v540_v40 }
 0x227   : > { %v708_v28 = vpop.f32.mrf.mxu0  ;;  %v997_v29 = vpop.f32.mrf.mxu1 }
 0x228   : > { %v935_v30 = vmul.f32 -1.442695, %v707_v27  ;;  %v709_v31 = vadd.f32 %v708_v28, %v536_v24 }
 0x229   : > { %v710_v32 = vpop.f32.mrf.mxu0  ;;  %v750_v33 = vpop.f32.mrf.mxu1 }
 0x22a   : > { %1145 = vpow2.f32 %v935_v30  ;;  %v936_v34 = vmul.f32 -1.442695, %v709_v31 }
 0x22b   : > { %v711_v23 = vpop.f32.mrf.mxu0  ;;  %v998_v35 = vpop.f32.mrf.mxu1 }
 0x22c   : > { %1147 = vpow2.f32 %v936_v34 }
 0x237   : > { %v1146_v36 = vpop.eup %1145 }
 0x238   : > { %v756_v37 = vadd.f32 1.0, %v1146_v36 }
 0x239   : > { %v1148_v38 = vpop.eup %1147 }
 0x23a   : > { %1149 = vrcp.f32 %v756_v37  ;;  %v762_v39 = vadd.f32 1.0, %v1148_v38 }
 0x23c   : > { %1151 = vrcp.f32 %v762_v39 }
 0x247   : > { %v1150_v41 = vpop.eup %1149 }
 0x248   : > { %v765_v44 = vmul.f32 %v1150_v41, %v748_v42 }
 0x249   : > { %v1152_v43 = vpop.eup %1151 }
 0x24a   : > { %v766_v45 = vmul.f32 %v1152_v43, %v491_v19 }
 0x24c   : > { %v767_v46 = vadd.f32 %v766_v45, %v765_v44 }
 0x24e   : > { %v768_v47 = vmax.f32 %v767_v46, 0.0 }
 0x250   : > { %769 = vst [vmem:[%s214_s20] sm:$0xff] %v768_v47 }
 0x251   : > { %1246 = shalt.err (!%p1243_p9)
}
 0x252   : > { %s1247_s23 = scalar_lea.hbm %s782_s4, 128  ;;  %s1251_s25 = scalar_lea.hbm %s1534_s3, 256 }
 0x253   : > { %p1248_p13 = scmp.ne.s32.totalorder %s782_s4, %s1247_s23  ;;  %p1252_p4 = scmp.lt.s32.totalorder %s782_s4, %s1534_s3 }
 0x254   : > { %p1253_p8 = scmp.lt.s32.totalorder %s1251_s25, %s1247_s23 }
 0x255   : > { %p1249_p5 = pnand %p1248_p13, %p1550_p0 }
 0x256   : > { %p1254_p7 = por %p1253_p8, %p1252_p4 }
 0x257   : > { %p1250_p10 = pneg %p1249_p5 }
 0x259   : > { %p1255_p11 = pnand %p1254_p7, %p1250_p10 }
 0x25b   : > { %1258 = shalt.err (!%p1255_p11)
}
 0x25c   : > { %1009 = dma.vmem_to_hbm [thread:$0]  (%p1550_p0), %s785_s27, 128, %s782_s4, %s771_s7  }
 0x25d PF: > { %s796_s5 = sand.u32 1, %s1289_s12   ;;  %p1551_p1 = scmp.ne.s32.totalorder %s1540_s19, 0 }
 0x25e   : > { %p1552_p2 = scmp.ge.s32.totalorder %s1301_s15, 2  ;;  %s797_s6 = scalar_lea.sflag [#allocation4], %s796_s5 }
 0x260   : > { %p1023_p6 = pnand %p1552_p2, %p1551_p1 }
 0x262   : > { %p1024_p12 = pneg %p1023_p6 }
 0x264   : > { %1284 = dma.done.wait (%p1024_p12), %s797_s6, 128  }
 0x265   : > { %1286 = vsyncadd (%p1024_p12), %s797_s6, 4294967168  ;;  %p17_p3 = scmp.ge.s32.totalorder %s1406_s9, 4   ;;  %s1553_s12 = smov %s1293_s13 }
 0x266   : > { %s1554_s13 = smov %s1297_s14  ;;  %s1555_s14 = smov %s1415_s17 }
 0x267   : > { %s1556_s15 = smov %s1406_s9  ;;  %19 = sbr.rel (!%p17_p3) target bundleno = 6 (0x6), region = 87 }
 0x26c   :  { %802 = vsyncpa [#allocation3], 1 }
 0x26d   :  { %804 = vsyncpa [#allocation3 + $0x1], 1 }
 0x26e   :  { %805 = vsyncpa [#allocation6], 1 }
 0x26f   :  { %806 = vsyncpa [#allocation4], 1 }
 0x270   :  { %808 = vsyncpa [#allocation4 + $0x1], 1 }

// kernel: _highway_pallas.1
= control target key start
LH: loop header
LB: loop body
LE: loop exit
PB: predicated region body
PF: predicated region fallthrough
CT: control target
= control target key end

     0   :  { %8 = vsyncpa [#allocation3], 0  ;;  %s1531_s0 = inlined_call_operand.hbm [shape: f32[16,128], index: 0, kind: input, shape index: {}]   ;;  %s1532_s1 = inlined_call_operand.hbm [shape: bf16[2,128,384], index: 1, kind: input, shape index: {}]   ;;  %s1533_s2 = inlined_call_operand.hbm [shape: f32[2,1,384], index: 2, kind: input, shape index: {}]   ;;  %s1534_s3 = inlined_call_operand.hbm [shape: f32[16,128], index: 3, kind: output, shape index: {}]  }
   0x1   :  { %10 = vsyncpa [#allocation3 + $0x1], 0 }
   0x2   :  { %11 = vsyncpa [#allocation6], 0 }
   0x3   :  { %12 = vsyncpa [#allocation4], 0 }
   0x4   :  { %14 = vsyncpa [#allocation4 + $0x1], 0  ;;  %s1334_s12 = smov 0   ;;  %s1336_s13 = smov 0  }
   0x5   :  { %s1338_s14 = smov 0   ;;  %s1340_s15 = smov 0  }
   0x6 LB: > { %s1355_s16 = sadd.s32 4294967295, %s1301_s15   ;;  %s873_s17 = sadd.s32 4294967294, %s1301_s15   ;;  %s1301_s15 = sphi %s1340_s15, %s1556_s15   ;;  %s1297_s14 = sphi %s1338_s14, %s1555_s14   ;;  %s1293_s13 = sphi %s1336_s13, %s1554_s13   ;;  %s1289_s12 = sphi %s1334_s12, %s1553_s12  }
   0x7   : > { %p40_p0 = scmp.ne.s32.totalorder %s1293_s13, %s1289_s12  ;;  %p1535_p1 = scmp.eq.s32.totalorder %s1355_s16, 0 }
   0x8   : > { %p112_p3 = scmp.eq.s32.totalorder %s873_s17, 1  ;;  %p874_p5 = scmp.ge.s32.totalorder %s1301_s15, 1 }
   0x9   : > { %p1364_p4 = por %p1535_p1, %p40_p0  ;;  %p119_p7 = scmp.lt.s32.totalorder %s1301_s15, 3 }
   0xa   : > { %p1369_p6 = por %p112_p3, %p40_p0  ;;  %s1303_s21 = smov [#allocation5]  }
   0xb   : > { %s1539_s18 = scalar_select %p1364_p4, 1, 0 }
   0xc   : > { %s1540_s19 = scalar_select %p1369_p6, 1, 0 }
   0xd   : > { %p1374_p8 = pnand %p874_p5, %p119_p7  ;;  %s131_s22 = sshll.u32 %s1303_s21, 4  ;;  %s132_s22 = int_to_ptr.vmem [resolvable:$true] %s131_s22 }
   0xe   : > { %s1304_s24 = smov [#allocation7]   ;;  %s1164_s26 = scalar_lea.vmem %s132_s22, 6144 }
   0xf   : > { %s1541_s20 = scalar_select %p1374_p8, 1, 0 }
  0x10   : > { %p1011_p9 = pneg %p1374_p8  ;;  %s144_s25 = sshll.u32 %s1304_s24, 4  ;;  %s145_s25 = int_to_ptr.vmem [resolvable:$true] %s144_s25 }
  0x11   : > { %p1165_p13 = scmp.ne.s32.totalorder %s132_s22, %s1164_s26  ;;  %p1172_p5 = scmp.lt.s32.totalorder %s132_s22, %s132_s22 }
  0x12   : > { %p1383_p11 = pnand %p1011_p9, %p1535_p1  ;;  %p1173_p7 = scmp.lt.s32.totalorder %s1164_s26, %s1164_s26 }
  0x14   : > { %p1155_p12 = pneg %p1383_p11  ;;  %p1174_p10 = por %p1173_p7, %p1172_p5 }
  0x16   : > { %p1167_p0 = pnand %p1165_p13, %p1155_p12 }
  0x18   : > { %p1168_p3 = pneg %p1167_p0 }
  0x1a   : > { %p1175_p9 = pnand %p1174_p10, %p1168_p3 }
  0x1c   : > { %1178 = shalt.err (!%p1175_p9)
}
  0x1d   : > { %s1305_s27 = smov 192   ;;  %s1306_s28 = smov 12  }
  0x1e   : > { %1014 = dma.hbm_to_vmem [thread:$0]  (!%p1383_p11), %s1532_s1, 6144, %s132_s22, [#allocation6], %s1305_s27, %s1305_s27, %s1306_s28  }
  0x1f   : > { %s1190_s4 = scalar_lea.vmem %s145_s25, 96  ;;  %p1198_p2 = scmp.lt.s32.totalorder %s145_s25, %s145_s25 }
  0x20   : > { %p1191_p1 = scmp.ne.s32.totalorder %s145_s25, %s1190_s4  ;;  %p1199_p6 = scmp.lt.s32.totalorder %s1190_s4, %s1190_s4 }
  0x22   : > { %p1193_p13 = pnand %p1191_p1, %p1155_p12  ;;  %p1200_p5 = por %p1199_p6, %p1198_p2 }
  0x24   : > { %p1194_p0 = pneg %p1193_p13 }
  0x26   : > { %p1201_p10 = pnand %p1200_p5, %p1194_p0 }
  0x28   : > { %1204 = shalt.err (!%p1201_p10)
}
  0x29   : > { %s1307_s5 = smov 48   ;;  %s1308_s6 = smov 3  }
  0x2a   : > { %1017 = dma.hbm_to_vmem [thread:$0]  (!%p1383_p11), %s1533_s2, 96, %s145_s25, [#allocation6], %s1307_s5, %s1307_s5, %s1308_s6  }
  0x2b   : > { %s1406_s9 = sadd.s32 1, %s1301_s15   ;;  %s27_s11 = sadd.s32 1, %s1297_s14 }
  0x2c   : > { %s24_s10 = ssub.s32 %s1301_s15, %s1406_s9  ;;  %p34_p2 = scmp.ne.s32.totalorder %s1297_s14, %s1293_s13 }
  0x2d   : > { %p25_p1 = scmp.eq.s32.totalorder %s24_s10, 0  ;;  %p35_p6 = scmp.eq.s32.totalorder %s1301_s15, 0 }
  0x2e   : > { %p1543_p3 = scmp.eq.s32.totalorder %s1355_s16, 1  ;;  %p1028_p9 = scmp.lt.s32.totalorder %s1301_s15, 2 }
  0x2f   : > { %s1415_s17 = scalar_select %p25_p1, %s1297_s14, %s27_s11  }
  0x30   : > { %p36_p12 = por %p35_p6, %p34_p2  ;;  %p1419_p7 = por %p1543_p3, %p34_p2 }
  0x31   : > { %s158_s22 = sand.u32 1, %s1297_s14   ;;  %s879_s24 = sshll.u32 %s1301_s15, 7 }
  0x32   : > { %s1544_s21 = scalar_select %p1419_p7, 1, 0 }
  0x33   : > { %s878_s23 = sshll.u32 %s158_s22, 3  ;;  %s1429_s27 = scalar_lea.hbm %s1531_s0, %s879_s24 }
  0x34   : > { %s162_s28 = scalar_lea.vmem [#allocation2], %s878_s23  ;;  %p1431_p11 = pnand %p1028_p9, %p36_p12 }
  0x35   : > { %s169_s29 = sshll.u32 %s162_s28, 4  ;;  %s159_s4 = scalar_lea.sflag [#allocation3], %s158_s22  ;;  %s170_s29 = int_to_ptr.vmem [resolvable:$true] %s169_s29 }
  0x36   : > { %s1205_s5 = scalar_lea.hbm %s1429_s27, 128  ;;  %p1207_p0 = pneg %p1431_p11 }
  0x37   : > { %p1206_p13 = scmp.ne.s32.totalorder %s1429_s27, %s1205_s5  ;;  %s1210_s8 = scalar_lea.hbm %s1531_s0, 256 }
  0x38   : > { %p1211_p1 = scmp.lt.s32.totalorder %s1429_s27, %s1531_s0  ;;  %p1212_p2 = scmp.lt.s32.totalorder %s1210_s8, %s1205_s5 }
  0x39   : > { %p1208_p5 = pnand %p1207_p0, %p1206_p13 }
  0x3a   : > { %p1213_p6 = por %p1212_p2, %p1211_p1 }
  0x3b   : > { %p1209_p10 = pneg %p1208_p5 }
  0x3d   : > { %p1214_p12 = pnand %p1213_p6, %p1209_p10 }
  0x3f   : > { %1217 = shalt.err (!%p1214_p12)
}
  0x40   : > { %s1218_s23 = scalar_lea.vmem %s170_s29, 128  ;;  %s1309_s22 = smov [#allocation2]  }
  0x41   : > { %p1219_p3 = scmp.ne.s32.totalorder %s170_s29, %s1218_s23  ;;  %s1223_s24 = sshll.u32 %s1309_s22, 4  ;;  %s1224_s24 = int_to_ptr.vmem [resolvable:$false] %s1223_s24 }
  0x42   : > { %s1225_s25 = scalar_lea.vmem %s1224_s24, 256  ;;  %p1226_p13 = scmp.lt.s32.totalorder %s170_s29, %s1224_s24 }
  0x43   : > { %p1221_p9 = pnand %p1219_p3, %p1207_p0  ;;  %p1227_p5 = scmp.lt.s32.totalorder %s1225_s25, %s1218_s23 }
  0x45   : > { %p1222_p7 = pneg %p1221_p9  ;;  %p1228_p4 = por %p1227_p5, %p1226_p13 }
  0x47   : > { %p1229_p8 = pnand %p1228_p4, %p1222_p7 }
  0x49   : > { %1232 = shalt.err (!%p1229_p8)
}
  0x4a   : > { %1021 = dma.hbm_to_vmem [thread:$0]  (!%p1431_p11), %s1429_s27, 128, %s170_s29, %s159_s4  }
  0x4b   : > { %p1546_p10 = scmp.ne.s32.totalorder %s1541_s20, 0 }
  0x4c   : > { %s1452_s26 = sand.u32 (!%p1546_p10), 1, %s1293_s13   ;;  %p1547_p4 = scmp.ne.s32.totalorder (!%p1546_p10), %s1539_s18, 0 }
  0x4d   : > { %178 = sbr.rel (%p1546_p10) target bundleno = 605 (0x25d), region = 32  ;;  %s881_s28 = sshll.u32 (!%p1546_p10), %s1452_s26, 3 }
  0x4e   : > { %s181_s5 = scalar_lea.sflag (!%p1546_p10), [#allocation3], %s1452_s26  ;;  %s1458_s6 = scalar_lea.vmem (!%p1546_p10), [#allocation2], %s881_s28 }
  0x52   : > { %1276 = dma.done.wait (%p1547_p4), %s181_s5, 128  }
  0x53   : > { %1278 = vsyncadd (%p1547_p4), %s181_s5, 4294967168  ;;  %p1548_p8 = scmp.eq.s32.totalorder %s1355_s16, 0 }
  0x55   : > { %1280 = dma.done.wait (%p1548_p8), [#allocation6], 6240   ;;  %p1549_p7 = pmov %p1548_p8 }
  0x56   : > { %v1310_v0 = vmov 0.0   ;;  %v1311_v1 = vmov 0   ;;  %vm1312_vm0 = vmmov 0   ;;  %v1073_v2 = vld [vmem:[#allocation5 + $0xac] ss:$12 sps:$4 sm:$0xff]   ;;  %v252_v52 = vlaneseq  ;;  %s938_s18 = sshll.u32 %s1355_s16, 7 }
  0x57   : > { %1282 = vsyncadd (%p1549_p7), [#allocation6], 4294961056  ;;  %959 = vmatprep.subr.bf16.mxu1 %v1310_v0  ;;  %427 = vmatprep.mubr.bf16.mxu0 %v1311_v1  ;;  %v1075_v3 = vld [vmem:[#allocation5 + $0xa8] ss:$12 sps:$4 sm:$0xff]   ;;  %v1078_v5 = vld [vmem:[#allocation5 + $0x90] ss:$12 sps:$4 sm:$0xff]   ;;  %s782_s4 = scalar_lea.hbm %s1534_s3, %s938_s18 }
  0x58   : > { %975 = vmatprep.mubr.msk.bf16.mxu1 %vm1312_vm0, %v1310_v0  ;;  %395 = vmatprep.subr.bf16.mxu0 %v1073_v2  ;;  %v1076_v4 = vld [vmem:[#allocation5 + $0x94] ss:$12 sps:$4 sm:$0xff]   ;;  %v1079_v6 = vld [vmem:[#allocation5 + $0x7c] ss:$12 sps:$4 sm:$0xff]   ;;  %v1081_v7 = vld [vmem:[#allocation5 + $0x78] ss:$12 sps:$4 sm:$0xff]  }
  0x59   : > { %396 = vmatpush1.bf16.msra.mxu0 %v1075_v3  ;;  %v1082_v8 = vld [vmem:[#allocation5 + $0x64] ss:$12 sps:$4 sm:$0xff]   ;;  %v1084_v9 = vld [vmem:[#allocation5 + $0x60] ss:$12 sps:$4 sm:$0xff]   ;;  %v1087_v13 = vld [vmem:[#allocation5 + $0x48] ss:$12 sps:$4 sm:$0xff]  }
  0x5a   : > { %397 = vmatprep.subr.bf16.mxu0 %v1076_v4  ;;  %v1097_v10 = vld [vmem:[#allocation5 + $0xb0] ss:$12 sps:$4 sm:$0xff]   ;;  %v1085_v11 = vld [vmem:[#allocation5 + $0x4c] ss:$12 sps:$4 sm:$0xff]   ;;  %v1088_v14 = vld [vmem:[#allocation5 + $0x34] ss:$12 sps:$4 sm:$0xff]  }
  0x5b   : > { %960 = vmatpush3.bf16.msra.mxu1 %v1097_v10  ;;  %v1098_v12 = vld [vmem:[#allocation5 + $0x98] ss:$12 sps:$4 sm:$0xff]   ;;  %v1090_v15 = vld [vmem:[#allocation5 + $0x30] ss:$12 sps:$4 sm:$0xff]   ;;  %v1099_v16 = vld [vmem:[#allocation5 + $0x80] ss:$12 sps:$4 sm:$0xff]  }
  0x5c   : > { %961 = vmatprep.subr.bf16.mxu1 %v1310_v0  ;;  %v1091_v17 = vld [vmem:[#allocation5 + $0x1c] ss:$12 sps:$4 sm:$0xff]   ;;  %v1093_v19 = vld [vmem:[#allocation5 + $0x18] ss:$12 sps:$4 sm:$0xff]   ;;  %v1096_v22 = vld [vmem:[#allocation5] ss:$12 sps:$4 sm:$0xff]  }
  0x5d   : > { %398 = vmatpush1.bf16.msra.mxu0 %v1078_v5  ;;  %v1100_v18 = vld [vmem:[#allocation5 + $0x68] ss:$12 sps:$4 sm:$0xff]   ;;  %v1094_v20 = vld [vmem:[#allocation5 + $0x4] ss:$12 sps:$4 sm:$0xff]   ;;  %v1103_v26 = vld [vmem:[#allocation5 + $0x20] ss:$12 sps:$4 sm:$0xff]  }
  0x5e   : > { %399 = vmatprep.subr.bf16.mxu0 %v1079_v6  ;;  %v1101_v21 = vld [vmem:[#allocation5 + $0x50] ss:$12 sps:$4 sm:$0xff]   ;;  %v1102_v24 = vld [vmem:[#allocation5 + $0x38] ss:$12 sps:$4 sm:$0xff]   ;;  %v1104_v27 = vld [vmem:[#allocation5 + $0x8] ss:$12 sps:$4 sm:$0xff]  }
  0x5f   : > { %962 = vmatpush3.bf16.msra.mxu1 %v1098_v12  ;;  %v1475_v23 = vld [vmem:[%s1458_s6] sm:$0xff]  ;;  %v1116_v36 = vld [vmem:[#allocation5 + $0x140] ss:$12 sps:$4 sm:$0xff]   ;;  %v253_v53 = vshrl.u32 %v252_v52, 7  ;;  %s214_s20 = scalar_lea.vmem [#allocation8], %s881_s28  ;;  %s771_s7 = scalar_lea.sflag [#allocation4], %s1452_s26 }
  0x60   : > { %963 = vmatprep.subr.bf16.mxu1 %v1310_v0  ;;  %v249_v25 = vpack.c.bf16 %v1475_v23, %v1475_v23  ;;  %v1107_v28 = vld [vmem:[#allocation5 + $0x16c] ss:$12 sps:$4 sm:$0xff]   ;;  %v1105_v29 = vld [vmem:[#allocation5 + $0x168] ss:$12 sps:$4 sm:$0xff]   ;;  %v1108_v30 = vld [vmem:[#allocation5 + $0x170] ss:$12 sps:$4 sm:$0xff]  }
  0x61   : > { %400 = vmatpush1.bf16.msra.mxu0 %v1081_v7  ;;  %v1111_v31 = vld [vmem:[#allocation5 + $0x154] ss:$12 sps:$4 sm:$0xff]   ;;  %v1109_v32 = vld [vmem:[#allocation5 + $0x150] ss:$12 sps:$4 sm:$0xff]   ;;  %v1112_v33 = vld [vmem:[#allocation5 + $0x158] ss:$12 sps:$4 sm:$0xff]  }
  0x62   : > { %401 = vmatprep.subr.bf16.mxu0 %v1082_v8  ;;  %v1115_v34 = vld [vmem:[#allocation5 + $0x13c] ss:$12 sps:$4 sm:$0xff]   ;;  %v1113_v35 = vld [vmem:[#allocation5 + $0x138] ss:$12 sps:$4 sm:$0xff]   ;;  %v1117_v37 = vld [vmem:[#allocation5 + $0x120] ss:$12 sps:$4 sm:$0xff]  }
  0x63   : > { %964 = vmatpush3.bf16.msra.mxu1 %v1099_v16  ;;  %v1119_v38 = vld [vmem:[#allocation5 + $0x124] ss:$12 sps:$4 sm:$0xff]   ;;  %v1120_v39 = vld [vmem:[#allocation5 + $0x128] ss:$12 sps:$4 sm:$0xff]   ;;  %v1123_v40 = vld [vmem:[#allocation5 + $0x10c] ss:$12 sps:$4 sm:$0xff]  }
  0x64   : > { %965 = vmatprep.subr.bf16.mxu1 %v1310_v0  ;;  %v1121_v41 = vld [vmem:[#allocation5 + $0x108] ss:$12 sps:$4 sm:$0xff]   ;;  %v1124_v42 = vld [vmem:[#allocation5 + $0x110] ss:$12 sps:$4 sm:$0xff]   ;;  %v1128_v45 = vld [vmem:[#allocation5 + $0xf8] ss:$12 sps:$4 sm:$0xff]  }
  0x65   : > { %402 = vmatpush1.bf16.msra.mxu0 %v1084_v9  ;;  %v1127_v43 = vld [vmem:[#allocation5 + $0xf4] ss:$12 sps:$4 sm:$0xff]   ;;  %v1125_v44 = vld [vmem:[#allocation5 + $0xf0] ss:$12 sps:$4 sm:$0xff]   ;;  %v1129_v47 = vld [vmem:[#allocation5 + $0xd8] ss:$12 sps:$4 sm:$0xff]  }
  0x66   : > { %403 = vmatprep.subr.bf16.mxu0 %v1085_v11  ;;  %v1131_v46 = vld [vmem:[#allocation5 + $0xdc] ss:$12 sps:$4 sm:$0xff]   ;;  %v1132_v48 = vld [vmem:[#allocation5 + $0xe0] ss:$12 sps:$4 sm:$0xff]   ;;  %v1135_v49 = vld [vmem:[#allocation5 + $0xc4] ss:$12 sps:$4 sm:$0xff]  }
  0x67   : > { %966 = vmatpush3.bf16.msra.mxu1 %v1100_v18  ;;  %v1133_v50 = vld [vmem:[#allocation5 + $0xc0] ss:$12 sps:$4 sm:$0xff]   ;;  %v1136_v51 = vld [vmem:[#allocation5 + $0xc8] ss:$12 sps:$4 sm:$0xff]   ;;  %v254_v54 = vsub.s32 0, %v253_v53  ;;  %v258_v56 = vsub.s32 1, %v253_v53 }
  0x68   : > { %967 = vmatprep.subr.bf16.mxu1 %v1310_v0  ;;  %v250_v55 = vld [vmem:[#allocation7] sm:$0x7]  ;;  %v262_v11 = vsub.s32 2, %v253_v53  ;;  %s784_s27 = sshll.u32 %s214_s20, 4  ;;  %p1550_p0 = scmp.ne.s32.totalorder %s1544_s21, 0  ;;  %s785_s27 = int_to_ptr.vmem [resolvable:$true] %s784_s27 }
  0x69   : > { %404 = vmatpush1.bf16.msra.mxu0 %v1087_v13  ;;  %v255_v57 = vrot.slane %v250_v55, %v254_v54  ;;  %v259_v58 = vrot.slane %v250_v55, %v258_v56  ;;  %s1233_s8 = scalar_lea.vmem %s785_s27, 128  ;;  %s1313_s10 = smov [#allocation8]  }
  0x6a   : > { %405 = vmatprep.subr.bf16.mxu0 %v1088_v14  ;;  %v263_v12 = vrot.slane %v250_v55, %v262_v11  ;;  %p1234_p11 = scmp.ne.s32.totalorder %s785_s27, %s1233_s8  ;;  %s1237_s11 = sshll.u32 %s1313_s10, 4  ;;  %s1238_s11 = int_to_ptr.vmem [resolvable:$false] %s1237_s11 }
  0x6b   : > { %968 = vmatpush3.bf16.msra.mxu1 %v1101_v21  ;;  %v527_v21 = vld [vmem:[#allocation7 + $0x3] sm:$0x7]  ;;  %s1239_s16 = scalar_lea.vmem %s1238_s11, 256  ;;  %p1240_p6 = scmp.lt.s32.totalorder %s785_s27, %s1238_s11 }
  0x6c   : > { %969 = vmatprep.subr.bf16.mxu1 %v1310_v0  ;;  %p1235_p1 = pnand %p1234_p11, %p1550_p0  ;;  %p1241_p12 = scmp.lt.s32.totalorder %s1239_s16, %s1233_s8 }
  0x6d   : > { %406 = vmatpush1.bf16.msra.mxu0 %v1090_v15 }
  0x6e   : > { %407 = vmatprep.subr.bf16.mxu0 %v1091_v17  ;;  %p1236_p2 = pneg %p1235_p1  ;;  %p1242_p3 = por %p1241_p12, %p1240_p6 }
  0x6f   : > { %970 = vmatpush3.bf16.msra.mxu1 %v1102_v24  ;;  %v536_v24 = vrot.slane %v527_v21, %v258_v56 }
  0x70   : > { %971 = vmatprep.subr.bf16.mxu1 %v1310_v0  ;;  %p1243_p9 = pnand %p1242_p3, %p1236_p2 }
  0x71   : > { %408 = vmatpush1.bf16.msra.mxu0 %v1093_v19 }
  0x72   : > { %409 = vmatprep.subr.bf16.mxu0 %v1094_v20 }
  0x73   : > { %972 = vmatpush3.bf16.msra.mxu1 %v1103_v26 }
  0x74   : > { %973 = vmatprep.subr.bf16.mxu1 %v1310_v0 }
  0x75   : > { %410 = vmatpush1.bf16.msra.mxu0 %v1096_v22  ;;  %v532_v22 = vrot.slane %v527_v21, %v254_v54 }
  0x76   : > { %672 = vmatprep.subr.bf16.mxu0 %v1107_v28 }
  0x77   : > { %974 = vmatpush3.bf16.msra.mxu1 %v1104_v27 }
  0x78   : > { %428 = vmatmul.mubr.bf16.vlgmr.msra.gmra.mxu0 %v249_v25  ;;  %979 = vmatprep.subr.bf16.mxu1 %v1310_v0 }
  0x79   : > { %704 = vmatprep.mubr.bf16.mxu0 %v1311_v1  ;;  %673 = vmatpush1.bf16.msra.mxu0 %v1105_v29 }
  0x7a   : > { %976 = vmatmul.mubr.bf16.vlgmr.msra.gmra.mxu1 %v249_v25  ;;  %674 = vmatprep.subr.bf16.mxu0 %v1111_v31 }
  0x7b   : > { %995 = vmatprep.mubr.msk.bf16.mxu1 %vm1312_vm0, %v1310_v0  ;;  %980 = vmatpush3.bf16.msra.mxu1 %v1108_v30 }
  0x7c   : > { %981 = vmatprep.subr.bf16.mxu1 %v1310_v0 }
  0x7d   : > { %675 = vmatpush1.bf16.msra.mxu0 %v1109_v32 }
  0x7e   : > { %676 = vmatprep.subr.bf16.mxu0 %v1115_v34 }
  0x7f   : > { %982 = vmatpush3.bf16.msra.mxu1 %v1112_v33 }
  0x80   : > { %983 = vmatprep.subr.bf16.mxu1 %v1310_v0 }
  0x81   : > { %677 = vmatpush1.bf16.msra.mxu0 %v1113_v35 }
  0x82   : > { %678 = vmatprep.subr.bf16.mxu0 %v1119_v38 }
  0x83   : > { %984 = vmatpush3.bf16.msra.mxu1 %v1116_v36 }
  0x84   : > { %985 = vmatprep.subr.bf16.mxu1 %v1310_v0 }
  0x85   : > { %679 = vmatpush1.bf16.msra.mxu0 %v1117_v37 }
  0x86   : > { %680 = vmatprep.subr.bf16.mxu0 %v1123_v40  ;;  %v540_v40 = vrot.slane %v527_v21, %v262_v11 }
  0x87   : > { %986 = vmatpush3.bf16.msra.mxu1 %v1120_v39 }
  0x88   : > { %987 = vmatprep.subr.bf16.mxu1 %v1310_v0 }
  0x89   : > { %681 = vmatpush1.bf16.msra.mxu0 %v1121_v41 }
  0x8a   : > { %682 = vmatprep.subr.bf16.mxu0 %v1127_v43 }
  0x8b   : > { %988 = vmatpush3.bf16.msra.mxu1 %v1124_v42 }
  0x8c   : > { %989 = vmatprep.subr.bf16.mxu1 %v1310_v0 }
  0x8d   : > { %683 = vmatpush1.bf16.msra.mxu0 %v1125_v44 }
  0x8e   : > { %684 = vmatprep.subr.bf16.mxu0 %v1131_v46 }
  0x8f   : > { %990 = vmatpush3.bf16.msra.mxu1 %v1128_v45 }
  0x90   : > { %991 = vmatprep.subr.bf16.mxu1 %v1310_v0 }
  0x91   : > { %685 = vmatpush1.bf16.msra.mxu0 %v1129_v47 }
  0x92   : > { %686 = vmatprep.subr.bf16.mxu0 %v1135_v49 }
  0x93   : > { %992 = vmatpush3.bf16.msra.mxu1 %v1132_v48 }
  0x94   : > { %993 = vmatprep.subr.bf16.mxu1 %v1310_v0 }
  0x95   : > { %687 = vmatpush1.bf16.msra.mxu0 %v1133_v50 }
  0x97   : > { %994 = vmatpush3.bf16.msra.mxu1 %v1136_v51 }
 0x138   : > { %v429_v59 = vpop.f32.mrf.mxu0 }
 0x139   : > { %v430_v60 = vadd.f32 %v429_v59, %v255_v57 }
 0x13a   : > { %v431_v61 = vpop.f32.mrf.mxu0  ;;  %v470_v3 = vpop.f32.mrf.mxu1 }
 0x13b   : > { %v909_v62 = vmul.f32 -1.442695, %v430_v60  ;;  %v432_v63 = vadd.f32 %v431_v61, %v259_v58  ;;  %v471_v13 = vadd.f32 %v470_v3, %v263_v12 }
 0x13c   : > { %v433_v1 = vpop.f32.mrf.mxu0  ;;  %v977_v4 = vpop.f32.mrf.mxu1 }
 0x13d   : > { %1137 = vpow2.f32 %v909_v62  ;;  %v910_v0 = vmul.f32 -1.442695, %v432_v63 }
 0x13e   : > { %v434_v2 = vpop.f32.mrf.mxu0  ;;  %v473_v5 = vpop.f32.mrf.mxu1 }
 0x13f   : > { %1139 = vpow2.f32 %v910_v0 }
 0x140   : > { %v978_v6 = vpop.f32.mrf.mxu1 }
 0x14a   : > { %v1138_v7 = vpop.eup %1137 }
 0x14b   : > { %v479_v8 = vadd.f32 1.0, %v1138_v7 }
 0x14c   : > { %v1140_v9 = vpop.eup %1139 }
 0x14d   : > { %1141 = vrcp.f32 %v479_v8  ;;  %v485_v10 = vadd.f32 1.0, %v1140_v9 }
 0x14f   : > { %1143 = vrcp.f32 %v485_v10 }
 0x15a   : > { %v1142_v14 = vpop.eup %1141 }
 0x15b   : > { %v488_v16 = vmul.f32 %v1142_v14, %v471_v13 }
 0x15c   : > { %v1144_v15 = vpop.eup %1143 }
 0x15d   : > { %v489_v17 = vmul.f32 %v1144_v15, %v1475_v23 }
 0x15f   : > { %v490_v18 = vadd.f32 %v489_v17, %v488_v16 }
 0x161   : > { %v491_v19 = vmax.f32 %v490_v18, 0.0 }
 0x163   : > { %v525_v20 = vpack.c.bf16 %v491_v19, %v491_v19 }
 0x165   : > { %705 = vmatmul.mubr.bf16.vlgmr.msra.gmra.mxu0 %v525_v20  ;;  %996 = vmatmul.mubr.bf16.vlgmr.msra.gmra.mxu1 %v525_v20 }
 0x225   : > { %v706_v25 = vpop.f32.mrf.mxu0  ;;  %v747_v26 = vpop.f32.mrf.mxu1 }
 0x226   : > { %v707_v27 = vadd.f32 %v706_v25, %v532_v22  ;;  %v748_v42 = vadd.f32 %v747_v26, %v540_v40 }
 0x227   : > { %v708_v28 = vpop.f32.mrf.mxu0  ;;  %v997_v29 = vpop.f32.mrf.mxu1 }
 0x228   : > { %v935_v30 = vmul.f32 -1.442695, %v707_v27  ;;  %v709_v31 = vadd.f32 %v708_v28, %v536_v24 }
 0x229   : > { %v710_v32 = vpop.f32.mrf.mxu0  ;;  %v750_v33 = vpop.f32.mrf.mxu1 }
 0x22a   : > { %1145 = vpow2.f32 %v935_v30  ;;  %v936_v34 = vmul.f32 -1.442695, %v709_v31 }
 0x22b   : > { %v711_v23 = vpop.f32.mrf.mxu0  ;;  %v998_v35 = vpop.f32.mrf.mxu1 }
 0x22c   : > { %1147 = vpow2.f32 %v936_v34 }
 0x237   : > { %v1146_v36 = vpop.eup %1145 }
 0x238   : > { %v756_v37 = vadd.f32 1.0, %v1146_v36 }
 0x239   : > { %v1148_v38 = vpop.eup %1147 }
 0x23a   : > { %1149 = vrcp.f32 %v756_v37  ;;  %v762_v39 = vadd.f32 1.0, %v1148_v38 }
 0x23c   : > { %1151 = vrcp.f32 %v762_v39 }
 0x247   : > { %v1150_v41 = vpop.eup %1149 }
 0x248   : > { %v765_v44 = vmul.f32 %v1150_v41, %v748_v42 }
 0x249   : > { %v1152_v43 = vpop.eup %1151 }
 0x24a   : > { %v766_v45 = vmul.f32 %v1152_v43, %v491_v19 }
 0x24c   : > { %v767_v46 = vadd.f32 %v766_v45, %v765_v44 }
 0x24e   : > { %v768_v47 = vmax.f32 %v767_v46, 0.0 }
 0x250   : > { %769 = vst [vmem:[%s214_s20] sm:$0xff] %v768_v47 }
 0x251   : > { %1246 = shalt.err (!%p1243_p9)
}
 0x252   : > { %s1247_s23 = scalar_lea.hbm %s782_s4, 128  ;;  %s1251_s25 = scalar_lea.hbm %s1534_s3, 256 }
 0x253   : > { %p1248_p13 = scmp.ne.s32.totalorder %s782_s4, %s1247_s23  ;;  %p1252_p4 = scmp.lt.s32.totalorder %s782_s4, %s1534_s3 }
 0x254   : > { %p1253_p8 = scmp.lt.s32.totalorder %s1251_s25, %s1247_s23 }
 0x255   : > { %p1249_p5 = pnand %p1248_p13, %p1550_p0 }
 0x256   : > { %p1254_p7 = por %p1253_p8, %p1252_p4 }
 0x257   : > { %p1250_p10 = pneg %p1249_p5 }
 0x259   : > { %p1255_p11 = pnand %p1254_p7, %p1250_p10 }
 0x25b   : > { %1258 = shalt.err (!%p1255_p11)
}
 0x25c   : > { %1009 = dma.vmem_to_hbm [thread:$0]  (%p1550_p0), %s785_s27, 128, %s782_s4, %s771_s7  }
 0x25d PF: > { %s796_s5 = sand.u32 1, %s1289_s12   ;;  %p1551_p1 = scmp.ne.s32.totalorder %s1540_s19, 0 }
 0x25e   : > { %p1552_p2 = scmp.ge.s32.totalorder %s1301_s15, 2  ;;  %s797_s6 = scalar_lea.sflag [#allocation4], %s796_s5 }
 0x260   : > { %p1023_p6 = pnand %p1552_p2, %p1551_p1 }
 0x262   : > { %p1024_p12 = pneg %p1023_p6 }
 0x264   : > { %1284 = dma.done.wait (%p1024_p12), %s797_s6, 128  }
 0x265   : > { %1286 = vsyncadd (%p1024_p12), %s797_s6, 4294967168  ;;  %p17_p3 = scmp.ge.s32.totalorder %s1406_s9, 4   ;;  %s1553_s12 = smov %s1293_s13 }
 0x266   : > { %s1554_s13 = smov %s1297_s14  ;;  %s1555_s14 = smov %s1415_s17 }
 0x267   : > { %s1556_s15 = smov %s1406_s9  ;;  %19 = sbr.rel (!%p17_p3) target bundleno = 6 (0x6), region = 87 }
 0x26c   :  { %802 = vsyncpa [#allocation3], 1 }
 0x26d   :  { %804 = vsyncpa [#allocation3 + $0x1], 1 }
 0x26e   :  { %805 = vsyncpa [#allocation6], 1 }
 0x26f   :  { %806 = vsyncpa [#allocation4], 1 }
 0x270   :  { %808 = vsyncpa [#allocation4 + $0x1], 1 }

</bundles_post_ra>
